<compile_context>
chip_gen: v7x
topology: tpu7x:2x2x1
jax: 0.10.0
libtpu: 0.0.40
codegen_flags: <defaults>
</compile_context>

<pallas_src>
import math

import jax
import jax.numpy as jnp
from jax import lax
from jax.experimental import pallas as pl
from jax.experimental.pallas import tpu as pltpu


def _round_up(x, m):
    return ((x + m - 1) // m) * m


def _cdiv(a, b):
    return (a + b - 1) // b


def _linear_kernel(x_ref, w_ref, b_ref, o_ref):
    # x_ref: [tile_m, K], w_ref: [N_pad, K], b_ref: [N_pad, 1],
    # o_ref: [N_pad, tile_m]  (batch on the lane axis -> lane-dense stores).
    # acc[n, m] = sum_k W[n, k] * x[m, k]  ==  (x @ W^T)^T, f32 accumulate on MXU.
    acc = lax.dot_general(
        w_ref[...], x_ref[...],
        dimension_numbers=(((1,), (1,)), ((), ())),
        preferred_element_type=jnp.float32,
    )
    o_ref[...] = (acc + b_ref[...]).astype(o_ref.dtype)


def _choose_tile_m(B, tile_m_max):
    """Row tile for the batch axis.

    Constraints: the batch axis is the sublane dim of the x block and the lane
    dim of the out block, so a tile must either equal B exactly (single block)
    or be a multiple of 128.  For B > 128 we also keep >= 2 grid steps so
    v7x's two TensorCores both get work via dimension_semantics=('parallel',).
    """
    if B <= 128:
        return B
    return max(128, min(tile_m_max, _round_up(_cdiv(B, 2), 128)))


def audio_classifier_reg_forward(x, weight, bias, *, tile_m_max=4096):
    """y = x @ weight.T + bias  (exactly nn.Linear forward).

    x:      [..., input_dim]
    weight: [output_dim, input_dim]   (PyTorch convention, used as-is)
    bias:   [output_dim]
    """
    *lead, K = x.shape
    B = math.prod(lead) if lead else 1
    x2d = x.reshape(B, K)

    N = weight.shape[0]
    # Pad the output dim only to the 8-row sublane granule (not 128 lanes):
    # batch sits on the lane axis, so stores stay lane-dense without inflating
    # HBM write traffic for a narrow head.  Padding touches only the tiny
    # weight/bias tensors, never x.
    N_pad = _round_up(N, 8)
    w_p = weight if N_pad == N else jnp.pad(weight, ((0, N_pad - N), (0, 0)))
    b_p = bias if N_pad == N else jnp.pad(bias, (0, N_pad - N))
    b2 = b_p.reshape(N_pad, 1)

    tile_m = _choose_tile_m(B, tile_m_max)
    grid = (_cdiv(B, tile_m),)

    out = pl.pallas_call(
        _linear_kernel,
        out_shape=jax.ShapeDtypeStruct((N_pad, B), x.dtype),
        grid_spec=pltpu.PrefetchScalarGridSpec(
            num_scalar_prefetch=0,
            grid=grid,
            in_specs=[
                # x tile: rows i*tile_m .. (i+1)*tile_m, full feature dim K.
                # Ragged last block is handled by Pallas (rows independent).
                pl.BlockSpec((tile_m, K), lambda i: (i, 0)),
                # weight: full [N_pad, K], constant block index -> DMA'd once.
                pl.BlockSpec((N_pad, K), lambda i: (0, 0)),
                # bias column: full [N_pad, 1], constant block index.
                pl.BlockSpec((N_pad, 1), lambda i: (0, 0)),
            ],
            # Output block: [N_pad, tile_m]; lane dim (batch) is tile_m
            # (multiple of 128 when tiled, or the full dim B) -> unmasked vst.
            out_specs=pl.BlockSpec((N_pad, tile_m), lambda i: (0, i)),
        ),
        compiler_params=pltpu.CompilerParams(
            dimension_semantics=("parallel",),
        ),
    )(x2d, w_p, b2)

    # Contiguous slab slice of the first N rows; for N == 1 the [1, B] -> [B, 1]
    # fix-up is a free reshape (identical row-major layout).
    y2d = out[:N, :]
    y2d = y2d.reshape(B, N) if N == 1 else y2d.T
    return y2d.reshape(*lead, N)


if __name__ == "__main__":
    # Small shapes consistent with the module: batch=8, input_dim=32, output_dim=1.
    B, input_dim, output_dim = 8, 32, 1

    key = jax.random.PRNGKey(0)
    kx, kw, kb = jax.random.split(key, 3)

    x = jax.random.normal(kx, (B, input_dim), dtype=jnp.float32)
    # Deterministic "init" mimicking nn.Linear's uniform(-1/sqrt(fan_in), 1/sqrt(fan_in)).
    bound = 1.0 / math.sqrt(float(input_dim))
    weight = jax.random.uniform(kw, (output_dim, input_dim),
                                minval=-bound, maxval=bound, dtype=jnp.float32)
    bias = jax.random.uniform(kb, (output_dim,),
                              minval=-bound, maxval=bound, dtype=jnp.float32)

    y = jax.block_until_ready(audio_classifier_reg_forward(x, weight, bias))

    # Correctness check against plain-JAX reference of the PyTorch forward.
    y_ref = x @ weight.T + bias
    assert y.shape == (B, output_dim)
    assert jnp.allclose(y, y_ref, atol=1e-5, rtol=1e-5)

    # Ragged, multi-block batch: exercises the partial last block and the
    # >=2-step "parallel" grid (v7x megacore path).
    B2 = 300
    x2 = jax.random.normal(kx, (B2, input_dim), dtype=jnp.float32)
    y2 = jax.block_until_ready(audio_classifier_reg_forward(x2, weight, bias))
    y2_ref = x2 @ weight.T + bias
    assert y2.shape == (B2, output_dim)
    assert jnp.allclose(y2, y2_ref, atol=1e-5, rtol=1e-5)

    print("KERNEL_OK")
</pallas_src>

<mosaic_0001>
module attributes {stable_mosaic.version = 11 : i64} {
  func.func @_linear_kernel(%arg0: i32, %arg1: memref<8x32xf32, #tpu.memory_space<vmem>>, %arg2: memref<8x32xf32, #tpu.memory_space<vmem>>, %arg3: memref<8x1xf32, #tpu.memory_space<vmem>>, %arg4: memref<8x8xf32, #tpu.memory_space<vmem>>) attributes {dimension_semantics = [#tpu.dimension_semantics<parallel>], iteration_bounds = array<i64: 1>, scalar_prefetch = 0 : i64, scratch_operands = 0 : i64, tpu.core_type = #tpu.core_type<tc>, window_params = [{transform_indices = @transform_0, window_bounds = array<i64: 8, 32>}, {pipeline_mode = #tpu.pipeline_mode<synchronous>, transform_indices = @transform_1, window_bounds = array<i64: 8, 32>}, {pipeline_mode = #tpu.pipeline_mode<synchronous>, transform_indices = @transform_2, window_bounds = array<i64: 8, 1>}, {transform_indices = @transform_3, window_bounds = array<i64: 8, 8>}]} {
    %c0 = arith.constant 0 : index
    %c0_0 = arith.constant 0 : index
    %0 = vector.load %arg2[%c0, %c0_0] : memref<8x32xf32, #tpu.memory_space<vmem>>, vector<8x32xf32>
    %c0_1 = arith.constant 0 : index
    %c0_2 = arith.constant 0 : index
    %1 = vector.load %arg1[%c0_1, %c0_2] : memref<8x32xf32, #tpu.memory_space<vmem>>, vector<8x32xf32>
    %cst = arith.constant dense<0.000000e+00> : vector<8x8xf32>
    %2 = tpu.matmul %0, %1, %cst {dimension_numbers = #tpu.dot_dimension_numbers<[1], [1], [0], [0], [0, 0, 1, 0], [], []>} : vector<8x32xf32>, vector<8x32xf32>, vector<8x8xf32> -> vector<8x8xf32>
    %c0_3 = arith.constant 0 : index
    %c0_4 = arith.constant 0 : index
    %3 = vector.load %arg3[%c0_3, %c0_4] : memref<8x1xf32, #tpu.memory_space<vmem>>, vector<8x1xf32>
    %4 = vector.broadcast %3 : vector<8x1xf32> to vector<8x8xf32>
    %5 = arith.addf %2, %4 : vector<8x8xf32>
    %c0_5 = arith.constant 0 : index
    %c0_6 = arith.constant 0 : index
    %6 = vector.load %arg4[%c0_5, %c0_6] : memref<8x8xf32, #tpu.memory_space<vmem>>, vector<8x8xf32>
    tpu.vector_store %arg4[%c0_5, %c0_6], %5 {strides = array<i32>} : memref<8x8xf32, #tpu.memory_space<vmem>>, vector<8x8xf32>,
    return
  }
  func.func @transform_0(%arg0: i32) -> (i32, i32) {
    %c0_i32 = arith.constant 0 : i32
    %c0_i32_0 = arith.constant 0 : i32
    return %arg0, %c0_i32 : i32, i32
  }
  func.func @transform_1(%arg0: i32) -> (i32, i32) {
    %c0_i32 = arith.constant 0 : i32
    %c0_i32_0 = arith.constant 0 : i32
    %c0_i32_1 = arith.constant 0 : i32
    return %c0_i32, %c0_i32_0 : i32, i32
  }
  func.func @transform_2(%arg0: i32) -> (i32, i32) {
    %c0_i32 = arith.constant 0 : i32
    %c0_i32_0 = arith.constant 0 : i32
    %c0_i32_1 = arith.constant 0 : i32
    return %c0_i32, %c0_i32_0 : i32, i32
  }
  func.func @transform_3(%arg0: i32) -> (i32, i32) {
    %c0_i32 = arith.constant 0 : i32
    %c0_i32_0 = arith.constant 0 : i32
    return %c0_i32, %arg0 : i32, i32
  }
}

</mosaic_0001>

<bundles_post_ra>
// kernel: tpu_custom_call.1
= control target key start
LH: loop header
LB: loop body
LE: loop exit
PB: predicated region body
PF: predicated region fallthrough
CT: control target
= control target key end

     0   :  { %8 = vsyncpa [#allocation3], 0  ;;  %s247_s0 = inlined_call_operand.vmem [shape: f32[8,32], index: 0, kind: input, shape index: {}]   ;;  %s248_s1 = inlined_call_operand.hbm [shape: f32[8,32], index: 1, kind: input, shape index: {}]   ;;  %s249_s2 = inlined_call_operand.vmem [shape: f32[8,1], index: 2, kind: input, shape index: {}]   ;;  %s250_s3 = inlined_call_operand.hbm [shape: f32[8,8], index: 3, kind: output, shape index: {}]  }
   0x1   :  { %9 = vsyncpa [#allocation4], 0  ;;  %s192_s12 = smov [#allocation2]   ;;  %s144_s16 = scalar_lea.hbm %s248_s1, 128 }
   0x2   :  { %s18_s13 = sshll.u32 %s192_s12, 4  ;;  %p145_p0 = scmp.ne.s32.totalorder %s248_s1, %s144_s16  ;;  %s19_s13 = int_to_ptr.vmem [resolvable:$true] %s18_s13 }
   0x3   :  { %p148_p1 = scmp.lt.u32.totalorder %s144_s16, %s248_s1 }
   0x5   :  { %p150_p2 = pnand %p148_p1, %p145_p0 }
   0x7   :  { %153 = shalt.err (!%p150_p2)
}
   0x8   :  { %s154_s21 = scalar_lea.vmem %s19_s13, 128  ;;  %p159_p4 = scmp.lt.s32.totalorder %s19_s13, %s19_s13 }
   0x9   :  { %p155_p3 = scmp.ne.s32.totalorder %s19_s13, %s154_s21  ;;  %p160_p5 = scmp.lt.s32.totalorder %s154_s21, %s154_s21 }
   0xb   :  { %p161_p6 = por %p160_p5, %p159_p4 }
   0xd   :  { %p162_p7 = pnand %p161_p6, %p155_p3 }
   0xf   :  { %165 = shalt.err (!%p162_p7)
}
  0x10   :  { %21 = dma.hbm_to_vmem [thread:$0]  %s248_s1, 128, %s19_s13, [#allocation3]  }
  0x11   :  { %188 = dma.done.wait [#allocation3], 128  }
  0x12   :  { %189 = vsyncadd [#allocation3], 4294967168  ;;  %v193_v0 = vmov 0.0   ;;  %vm194_vm0 = vmmov 0   ;;  %v195_v1 = vmov 0   ;;  %vm35_vm1 = vcmask 261120  }
  0x13   :  { %133 = vmatprep.subr.mxu0 %v193_v0  ;;  %135 = vmatprep.mubr.msk.f32.mxu0 %vm194_vm0, %v193_v0  ;;  %v28_v2 = vld [vmem:[%s247_s0] sm:$0xff]  ;;  %s196_s1 = smov [#allocation5]   ;;  %vm112_vm2 = vcmask 64512  }
  0x14   :  { %143 = vset.pattern.permute.xlu0 %v195_v1  ;;  %v29_v3 = vld [vmem:[%s249_s2] sm:$0xff]  ;;  %134 = vmatpush3.xpose.msk.msra.mxu0 %vm35_vm1, %v28_v2  ;;  %s120_s28 = sshll.u32 %s196_s1, 4  ;;  %s121_s28 = int_to_ptr.vmem [resolvable:$true] %s120_s28 }
  0x15   :  { %v27_v4 = vld [vmem:[#allocation2] sm:$0xff]  ;;  %32 = vperm.xlu0 %143, %v29_v3   ;;  %s166_s29 = scalar_lea.vmem %s121_s28, 128  ;;  %p171_p9 = scmp.lt.s32.totalorder %s121_s28, %s121_s28 }
  0x16   :  { %p167_p8 = scmp.ne.s32.totalorder %s121_s28, %s166_s29  ;;  %p172_p10 = scmp.lt.s32.totalorder %s166_s29, %s166_s29 }
  0x17   :  { %136 = vmatmul.mubr.msk.f32.vlgmr.msra.gmra.mrb[0].mxu0 %vm35_vm1, %v27_v4 }
  0x18   :  { %p173_p11 = por %p172_p10, %p171_p9 }
  0x1a   :  { %p174_p12 = pnand %p173_p11, %p167_p8 }
  0x94   :  { %v33_v5 = vpop.permute.xlu0 %32 }
  0xea   :  { %v108_v6 = vpop.f32.mrb[0].mxu0 }
  0xeb   :  { %v109_v7 = vadd.f32 %v108_v6, %v33_v5  ;;  %v137_v8 = vpop.f32.mrb[1].mxu0 }
  0xed   :  { %113 = vst.msk [vmem:[#allocation5] sm:$0xff] %vm112_vm2, %v109_v7 }
  0xee   :  { %177 = shalt.err (!%p174_p12)
}
  0xef   :  { %s178_s30 = scalar_lea.hbm %s250_s3, 128 }
  0xf0   :  { %p179_p13 = scmp.ne.s32.totalorder %s250_s3, %s178_s30  ;;  %p182_p0 = scmp.lt.u32.totalorder %s178_s30, %s250_s3 }
  0xf2   :  { %p184_p1 = pnand %p182_p0, %p179_p13 }
  0xf4   :  { %187 = shalt.err (!%p184_p1)
}
  0xf5   :  { %123 = dma.vmem_to_hbm [thread:$0]  %s121_s28, 128, %s250_s3, [#allocation4]  }
  0xf6   :  { %190 = dma.done.wait [#allocation4], 128  }
  0xf7   :  { %191 = vsyncadd [#allocation4], 4294967168 }
  0xf8   :  { %127 = vsyncpa [#allocation3], 1 }
  0xf9   :  { %128 = vsyncpa [#allocation4], 1 }

</bundles_post_ra>
